<compile_context>
chip_gen: v7x
topology: tpu7x:2x2x1
jax: 0.10.0
libtpu: 0.0.40
codegen_flags: <defaults>
</compile_context>

<pallas_src>
import jax
import jax.numpy as jnp
from jax.experimental import pallas as pl
from jax.experimental.pallas import tpu as pltpu

OUT_DIM = 7            # fc4 real output features
H1, H2, H3 = 128, 64, 32
HP = 128               # lane-dense padded width used for all hidden/output tiles


def _round_up(n, m):
    return ((n + m - 1) // m) * m


def _mlp_kernel(xf_ref, yf_ref,
                w1x_ref, w1y_ref, b1_ref,
                w2_ref, b2_ref,
                w3_ref, b3_ref,
                w4_ref, b4_ref,
                o_ref):
    """fc1(+fused concat)+ReLU -> fc2+ReLU -> fc3+ReLU -> fc4 (all lane-padded).

    Dot operands are bf16 (MXU); accumulation / bias / ReLU in f32.
    """
    # Layer 1: concat(x, y) @ w1 == x @ w1_top + y @ w1_bot (concat fused away).
    h = (jnp.dot(xf_ref[...], w1x_ref[...], preferred_element_type=jnp.float32)
         + jnp.dot(yf_ref[...], w1y_ref[...], preferred_element_type=jnp.float32)
         + b1_ref[...])
    h = jnp.maximum(h, 0.0)

    h = jnp.dot(h.astype(jnp.bfloat16), w2_ref[...],
                preferred_element_type=jnp.float32) + b2_ref[...]
    h = jnp.maximum(h, 0.0)

    h = jnp.dot(h.astype(jnp.bfloat16), w3_ref[...],
                preferred_element_type=jnp.float32) + b3_ref[...]
    h = jnp.maximum(h, 0.0)

    h = jnp.dot(h.astype(jnp.bfloat16), w4_ref[...],
                preferred_element_type=jnp.float32) + b4_ref[...]

    o_ref[...] = h.astype(o_ref.dtype)


def _choose_batch_tile(B, Dh, vmem_budget_bytes=32 * 1024 * 1024):
    """Largest batch tile (<=512, multiple of 16) that fits the VMEM budget."""
    # Resident bf16 weights (w1 halves dominate) + f32 biases, all lane-padded.
    weight_bytes = (2 * Dh * H1 + H1 * HP + HP * HP + HP * HP) * 2
    bias_bytes = (H1 + 3 * HP) * 4
    remaining = max(vmem_budget_bytes - weight_bytes - bias_bytes, 1 << 20)
    # Per batch row, double-buffered: 2 bf16 input tiles + 1 f32 output tile.
    per_row = 2 * (2 * Dh * 2) + 2 * HP * 4
    tb = remaining // per_row
    tb = max(16, min(512, (tb // 16) * 16))
    tb = min(tb, _round_up(B, 16))
    return int(tb)


def feature_distance_estimator(x, y, params):
    """Forward pass of FeatureDistanceEstimator (eval mode).

    x, y: (B, C, H, W) float32.
    params: dict with w1..w4 stored as (in, out) (transpose of nn.Linear) and
    b1..b4 as (1, out).  Returns (B, 7) float32.
    """
    B = x.shape[0]
    xf = x.reshape(B, -1)
    yf = y.reshape(B, -1)
    Dh = xf.shape[1]
    assert yf.shape[1] == Dh, "x and y must flatten to the same feature width"
    assert params["w1"].shape[0] == 2 * Dh, "w1 fan-in must equal 2*C*H*W"

    # bf16 operands for the MXU; accumulation stays f32 inside the kernel.
    xf = xf.astype(jnp.bfloat16)
    yf = yf.astype(jnp.bfloat16)

    # Split fc1's weight so the concat never materializes; zero-pad every
    # hidden / output width to 128 lanes (padded columns compute exactly 0).
    w1 = params["w1"].astype(jnp.bfloat16)
    w1x, w1y = w1[:Dh], w1[Dh:]
    b1 = params["b1"].astype(jnp.float32)

    w2 = jnp.zeros((H1, HP), jnp.bfloat16).at[:, :H2].set(
        params["w2"].astype(jnp.bfloat16))
    b2 = jnp.zeros((1, HP), jnp.float32).at[:, :H2].set(
        params["b2"].astype(jnp.float32))

    w3 = jnp.zeros((HP, HP), jnp.bfloat16).at[:H2, :H3].set(
        params["w3"].astype(jnp.bfloat16))
    b3 = jnp.zeros((1, HP), jnp.float32).at[:, :H3].set(
        params["b3"].astype(jnp.float32))

    w4 = jnp.zeros((HP, HP), jnp.bfloat16).at[:H3, :OUT_DIM].set(
        params["w4"].astype(jnp.bfloat16))
    b4 = jnp.zeros((1, HP), jnp.float32).at[:, :OUT_DIM].set(
        params["b4"].astype(jnp.float32))

    TB = _choose_batch_tile(B, Dh)
    B_pad = _round_up(B, TB)
    if B_pad != B:
        pad = ((0, B_pad - B), (0, 0))
        xf = jnp.pad(xf, pad)
        yf = jnp.pad(yf, pad)

    grid = (B_pad // TB,)

    def row_spec(i):      # batch-tiled arrays
        return (i, 0)

    def const_spec(i):    # VMEM-resident weights/biases (no re-DMA across steps)
        return (0, 0)

    flops = 2 * B_pad * (2 * Dh * H1 + H1 * HP + HP * HP + HP * HP)
    bytes_accessed = ((xf.size + yf.size) * 2
                      + (w1x.size + w1y.size + w2.size + w3.size + w4.size) * 2
                      + (b1.size + b2.size + b3.size + b4.size) * 4
                      + B_pad * HP * 4)

    out = pl.pallas_call(
        _mlp_kernel,
        out_shape=jax.ShapeDtypeStruct((B_pad, HP), jnp.float32),
        grid=grid,
        in_specs=[
            pl.BlockSpec((TB, Dh), row_spec),      # x_flat tile
            pl.BlockSpec((TB, Dh), row_spec),      # y_flat tile
            pl.BlockSpec((Dh, H1), const_spec),    # w1 top half
            pl.BlockSpec((Dh, H1), const_spec),    # w1 bottom half
            pl.BlockSpec((1, H1), const_spec),     # b1
            pl.BlockSpec((H1, HP), const_spec),    # w2 (lane-padded)
            pl.BlockSpec((1, HP), const_spec),     # b2 (lane-padded)
            pl.BlockSpec((HP, HP), const_spec),    # w3 (lane-padded)
            pl.BlockSpec((1, HP), const_spec),     # b3 (lane-padded)
            pl.BlockSpec((HP, HP), const_spec),    # w4 (lane-padded)
            pl.BlockSpec((1, HP), const_spec),     # b4 (lane-padded)
        ],
        out_specs=pl.BlockSpec((TB, HP), row_spec),
        compiler_params=pltpu.CompilerParams(
            dimension_semantics=("parallel",),
            vmem_limit_bytes=48 * 1024 * 1024),
        cost_estimate=pl.CostEstimate(
            flops=flops, transcendentals=0, bytes_accessed=bytes_accessed),
    )(xf, yf, w1x, w1y, b1, w2, b2, w3, b3, w4, b4)

    return out[:B, :OUT_DIM]


def init_params(key, input_size):
    """Deterministic init mimicking nn.Linear's U(-1/sqrt(fan_in), 1/sqrt(fan_in)).

    Weights are stored transposed relative to PyTorch: (in, out).
    """
    dims = [(input_size, H1), (H1, H2), (H2, H3), (H3, OUT_DIM)]
    params = {}
    for i, (fan_in, fan_out) in enumerate(dims, start=1):
        key, kw, kb = jax.random.split(key, 3)
        bound = 1.0 / jnp.sqrt(jnp.float32(fan_in))
        params[f"w{i}"] = jax.random.uniform(
            kw, (fan_in, fan_out), jnp.float32, -bound, bound)
        params[f"b{i}"] = jax.random.uniform(
            kb, (1, fan_out), jnp.float32, -bound, bound)
    return params


def _reference_forward(x, y, params):
    """Pure-JAX reference using the same bf16-operand / f32-accumulate math."""
    B = x.shape[0]
    z = jnp.concatenate([x.reshape(B, -1), y.reshape(B, -1)], axis=-1)

    def dot(a, w):
        return jnp.dot(a.astype(jnp.bfloat16), w.astype(jnp.bfloat16),
                       preferred_element_type=jnp.float32)

    h = jnp.maximum(dot(z, params["w1"]) + params["b1"], 0.0)
    h = jnp.maximum(dot(h, params["w2"]) + params["b2"], 0.0)
    h = jnp.maximum(dot(h, params["w3"]) + params["b3"], 0.0)
    return dot(h, params["w4"]) + params["b4"]


if __name__ == "__main__":
    key = jax.random.PRNGKey(0)
    kx, ky, kp = jax.random.split(key, 3)

    # Small shapes consistent with the module: x, y are (B, C, H, W) feature maps.
    B, C, H, W = 2, 4, 16, 16
    input_size = 2 * C * H * W  # = 2048, the nn.Linear(input_size, 128) fan-in

    x = jax.random.normal(kx, (B, C, H, W), jnp.float32)
    y = jax.random.normal(ky, (B, C, H, W), jnp.float32)
    params = init_params(kp, input_size)

    out = feature_distance_estimator(x, y, params)
    out = jax.block_until_ready(out)

    ref = _reference_forward(x, y, params)
    assert out.shape == (B, OUT_DIM), out.shape
    max_diff = float(jnp.max(jnp.abs(out - ref)))
    assert jnp.allclose(out, ref, atol=1e-2, rtol=1e-2), (
        f"max abs diff {max_diff}")

    print("KERNEL_OK")
</pallas_src>

<mosaic_0001>
module attributes {stable_mosaic.version = 11 : i64} {
  func.func @_mlp_kernel(%arg0: i32, %arg1: memref<16x1024xbf16, #tpu.memory_space<vmem>>, %arg2: memref<16x1024xbf16, #tpu.memory_space<vmem>>, %arg3: memref<1024x128xbf16, #tpu.memory_space<vmem>>, %arg4: memref<1024x128xbf16, #tpu.memory_space<vmem>>, %arg5: memref<1x128xf32, #tpu.memory_space<vmem>>, %arg6: memref<128x128xbf16, #tpu.memory_space<vmem>>, %arg7: memref<1x128xf32, #tpu.memory_space<vmem>>, %arg8: memref<128x128xbf16, #tpu.memory_space<vmem>>, %arg9: memref<1x128xf32, #tpu.memory_space<vmem>>, %arg10: memref<128x128xbf16, #tpu.memory_space<vmem>>, %arg11: memref<1x128xf32, #tpu.memory_space<vmem>>, %arg12: memref<16x128xf32, #tpu.memory_space<vmem>>) attributes {dimension_semantics = [#tpu.dimension_semantics<parallel>], iteration_bounds = array<i64: 1>, scalar_prefetch = 0 : i64, scratch_operands = 0 : i64, tpu.core_type = #tpu.core_type<tc>, window_params = [{transform_indices = @transform_0, window_bounds = array<i64: 16, 1024>}, {transform_indices = @transform_1, window_bounds = array<i64: 16, 1024>}, {pipeline_mode = #tpu.pipeline_mode<synchronous>, transform_indices = @transform_2, window_bounds = array<i64: 1024, 128>}, {pipeline_mode = #tpu.pipeline_mode<synchronous>, transform_indices = @transform_3, window_bounds = array<i64: 1024, 128>}, {pipeline_mode = #tpu.pipeline_mode<synchronous>, transform_indices = @transform_4, window_bounds = array<i64: 1, 128>}, {pipeline_mode = #tpu.pipeline_mode<synchronous>, transform_indices = @transform_5, window_bounds = array<i64: 128, 128>}, {pipeline_mode = #tpu.pipeline_mode<synchronous>, transform_indices = @transform_6, window_bounds = array<i64: 1, 128>}, {pipeline_mode = #tpu.pipeline_mode<synchronous>, transform_indices = @transform_7, window_bounds = array<i64: 128, 128>}, {pipeline_mode = #tpu.pipeline_mode<synchronous>, transform_indices = @transform_8, window_bounds = array<i64: 1, 128>}, {pipeline_mode = #tpu.pipeline_mode<synchronous>, transform_indices = @transform_9, window_bounds = array<i64: 128, 128>}, {pipeline_mode = #tpu.pipeline_mode<synchronous>, transform_indices = @transform_10, window_bounds = array<i64: 1, 128>}, {transform_indices = @transform_11, window_bounds = array<i64: 16, 128>}]} {
    %c0 = arith.constant 0 : index
    %c0_0 = arith.constant 0 : index
    %0 = vector.load %arg1[%c0, %c0_0] : memref<16x1024xbf16, #tpu.memory_space<vmem>>, vector<16x1024xbf16>
    %c0_1 = arith.constant 0 : index
    %c0_2 = arith.constant 0 : index
    %1 = vector.load %arg3[%c0_1, %c0_2] : memref<1024x128xbf16, #tpu.memory_space<vmem>>, vector<1024x128xbf16>
    %cst = arith.constant dense<0.000000e+00> : vector<16x128xf32>
    %2 = tpu.matmul %0, %1, %cst {dimension_numbers = #tpu.dot_dimension_numbers<[1], [0], [0], [1], [0, 0, 1, 1], [], []>} : vector<16x1024xbf16>, vector<1024x128xbf16>, vector<16x128xf32> -> vector<16x128xf32>
    %c0_3 = arith.constant 0 : index
    %c0_4 = arith.constant 0 : index
    %3 = vector.load %arg2[%c0_3, %c0_4] : memref<16x1024xbf16, #tpu.memory_space<vmem>>, vector<16x1024xbf16>
    %c0_5 = arith.constant 0 : index
    %c0_6 = arith.constant 0 : index
    %4 = vector.load %arg4[%c0_5, %c0_6] : memref<1024x128xbf16, #tpu.memory_space<vmem>>, vector<1024x128xbf16>
    %cst_7 = arith.constant dense<0.000000e+00> : vector<16x128xf32>
    %5 = tpu.matmul %3, %4, %cst_7 {dimension_numbers = #tpu.dot_dimension_numbers<[1], [0], [0], [1], [0, 0, 1, 1], [], []>} : vector<16x1024xbf16>, vector<1024x128xbf16>, vector<16x128xf32> -> vector<16x128xf32>
    %6 = arith.addf %2, %5 : vector<16x128xf32>
    %c0_8 = arith.constant 0 : index
    %c0_9 = arith.constant 0 : index
    %7 = vector.load %arg5[%c0_8, %c0_9] : memref<1x128xf32, #tpu.memory_space<vmem>>, vector<1x128xf32>
    %8 = vector.broadcast %7 : vector<1x128xf32> to vector<16x128xf32>
    %9 = arith.addf %6, %8 : vector<16x128xf32>
    %cst_10 = arith.constant 0.000000e+00 : f32
    %10 = vector.broadcast %cst_10 : f32 to vector<16x128xf32>
    %11 = arith.maximumf %9, %10 : vector<16x128xf32>
    %12 = arith.truncf %11 : vector<16x128xf32> to vector<16x128xbf16>
    %c0_11 = arith.constant 0 : index
    %c0_12 = arith.constant 0 : index
    %13 = vector.load %arg6[%c0_11, %c0_12] : memref<128x128xbf16, #tpu.memory_space<vmem>>, vector<128x128xbf16>
    %cst_13 = arith.constant dense<0.000000e+00> : vector<16x128xf32>
    %14 = tpu.matmul %12, %13, %cst_13 {dimension_numbers = #tpu.dot_dimension_numbers<[1], [0], [0], [1], [0, 0, 1, 1], [], []>} : vector<16x128xbf16>, vector<128x128xbf16>, vector<16x128xf32> -> vector<16x128xf32>
    %c0_14 = arith.constant 0 : index
    %c0_15 = arith.constant 0 : index
    %15 = vector.load %arg7[%c0_14, %c0_15] : memref<1x128xf32, #tpu.memory_space<vmem>>, vector<1x128xf32>
    %16 = vector.broadcast %15 : vector<1x128xf32> to vector<16x128xf32>
    %17 = arith.addf %14, %16 : vector<16x128xf32>
    %cst_16 = arith.constant 0.000000e+00 : f32
    %18 = vector.broadcast %cst_16 : f32 to vector<16x128xf32>
    %19 = arith.maximumf %17, %18 : vector<16x128xf32>
    %20 = arith.truncf %19 : vector<16x128xf32> to vector<16x128xbf16>
    %c0_17 = arith.constant 0 : index
    %c0_18 = arith.constant 0 : index
    %21 = vector.load %arg8[%c0_17, %c0_18] : memref<128x128xbf16, #tpu.memory_space<vmem>>, vector<128x128xbf16>
    %cst_19 = arith.constant dense<0.000000e+00> : vector<16x128xf32>
    %22 = tpu.matmul %20, %21, %cst_19 {dimension_numbers = #tpu.dot_dimension_numbers<[1], [0], [0], [1], [0, 0, 1, 1], [], []>} : vector<16x128xbf16>, vector<128x128xbf16>, vector<16x128xf32> -> vector<16x128xf32>
    %c0_20 = arith.constant 0 : index
    %c0_21 = arith.constant 0 : index
    %23 = vector.load %arg9[%c0_20, %c0_21] : memref<1x128xf32, #tpu.memory_space<vmem>>, vector<1x128xf32>
    %24 = vector.broadcast %23 : vector<1x128xf32> to vector<16x128xf32>
    %25 = arith.addf %22, %24 : vector<16x128xf32>
    %cst_22 = arith.constant 0.000000e+00 : f32
    %26 = vector.broadcast %cst_22 : f32 to vector<16x128xf32>
    %27 = arith.maximumf %25, %26 : vector<16x128xf32>
    %28 = arith.truncf %27 : vector<16x128xf32> to vector<16x128xbf16>
    %c0_23 = arith.constant 0 : index
    %c0_24 = arith.constant 0 : index
    %29 = vector.load %arg10[%c0_23, %c0_24] : memref<128x128xbf16, #tpu.memory_space<vmem>>, vector<128x128xbf16>
    %cst_25 = arith.constant dense<0.000000e+00> : vector<16x128xf32>
    %30 = tpu.matmul %28, %29, %cst_25 {dimension_numbers = #tpu.dot_dimension_numbers<[1], [0], [0], [1], [0, 0, 1, 1], [], []>} : vector<16x128xbf16>, vector<128x128xbf16>, vector<16x128xf32> -> vector<16x128xf32>
    %c0_26 = arith.constant 0 : index
    %c0_27 = arith.constant 0 : index
    %31 = vector.load %arg11[%c0_26, %c0_27] : memref<1x128xf32, #tpu.memory_space<vmem>>, vector<1x128xf32>
    %32 = vector.broadcast %31 : vector<1x128xf32> to vector<16x128xf32>
    %33 = arith.addf %30, %32 : vector<16x128xf32>
    %c0_28 = arith.constant 0 : index
    %c0_29 = arith.constant 0 : index
    %34 = vector.load %arg12[%c0_28, %c0_29] : memref<16x128xf32, #tpu.memory_space<vmem>>, vector<16x128xf32>
    tpu.vector_store %arg12[%c0_28, %c0_29], %33 {strides = array<i32>} : memref<16x128xf32, #tpu.memory_space<vmem>>, vector<16x128xf32>,
    return
  }
  func.func @transform_0(%arg0: i32) -> (i32, i32) {
    %c0_i32 = arith.constant 0 : i32
    %c0_i32_0 = arith.constant 0 : i32
    return %arg0, %c0_i32 : i32, i32
  }
  func.func @transform_1(%arg0: i32) -> (i32, i32) {
    %c0_i32 = arith.constant 0 : i32
    %c0_i32_0 = arith.constant 0 : i32
    return %arg0, %c0_i32 : i32, i32
  }
  func.func @transform_2(%arg0: i32) -> (i32, i32) {
    %c0_i32 = arith.constant 0 : i32
    %c0_i32_0 = arith.constant 0 : i32
    %c0_i32_1 = arith.constant 0 : i32
    return %c0_i32, %c0_i32_0 : i32, i32
  }
  func.func @transform_3(%arg0: i32) -> (i32, i32) {
    %c0_i32 = arith.constant 0 : i32
    %c0_i32_0 = arith.constant 0 : i32
    %c0_i32_1 = arith.constant 0 : i32
    return %c0_i32, %c0_i32_0 : i32, i32
  }
  func.func @transform_4(%arg0: i32) -> (i32, i32) {
    %c0_i32 = arith.constant 0 : i32
    %c0_i32_0 = arith.constant 0 : i32
    %c0_i32_1 = arith.constant 0 : i32
    return %c0_i32, %c0_i32_0 : i32, i32
  }
  func.func @transform_5(%arg0: i32) -> (i32, i32) {
    %c0_i32 = arith.constant 0 : i32
    %c0_i32_0 = arith.constant 0 : i32
    %c0_i32_1 = arith.constant 0 : i32
    return %c0_i32, %c0_i32_0 : i32, i32
  }
  func.func @transform_6(%arg0: i32) -> (i32, i32) {
    %c0_i32 = arith.constant 0 : i32
    %c0_i32_0 = arith.constant 0 : i32
    %c0_i32_1 = arith.constant 0 : i32
    return %c0_i32, %c0_i32_0 : i32, i32
  }
  func.func @transform_7(%arg0: i32) -> (i32, i32) {
    %c0_i32 = arith.constant 0 : i32
    %c0_i32_0 = arith.constant 0 : i32
    %c0_i32_1 = arith.constant 0 : i32
    return %c0_i32, %c0_i32_0 : i32, i32
  }
  func.func @transform_8(%arg0: i32) -> (i32, i32) {
    %c0_i32 = arith.constant 0 : i32
    %c0_i32_0 = arith.constant 0 : i32
    %c0_i32_1 = arith.constant 0 : i32
    return %c0_i32, %c0_i32_0 : i32, i32
  }
  func.func @transform_9(%arg0: i32) -> (i32, i32) {
    %c0_i32 = arith.constant 0 : i32
    %c0_i32_0 = arith.constant 0 : i32
    %c0_i32_1 = arith.constant 0 : i32
    return %c0_i32, %c0_i32_0 : i32, i32
  }
  func.func @transform_10(%arg0: i32) -> (i32, i32) {
    %c0_i32 = arith.constant 0 : i32
    %c0_i32_0 = arith.constant 0 : i32
    %c0_i32_1 = arith.constant 0 : i32
    return %c0_i32, %c0_i32_0 : i32, i32
  }
  func.func @transform_11(%arg0: i32) -> (i32, i32) {
    %c0_i32 = arith.constant 0 : i32
    %c0_i32_0 = arith.constant 0 : i32
    return %arg0, %c0_i32 : i32, i32
  }
}

</mosaic_0001>

<bundles_post_ra>
// kernel: tpu_custom_call.1
= control target key start
LH: loop header
LB: loop body
LE: loop exit
PB: predicated region body
PF: predicated region fallthrough
CT: control target
= control target key end

     0   :  { %16 = vsyncpa [#allocation3], 0  ;;  %s2983_s0 = inlined_call_operand.hbm [shape: bf16[16,1024], index: 0, kind: input, shape index: {}]   ;;  %s2984_s1 = inlined_call_operand.hbm [shape: bf16[16,1024], index: 1, kind: input, shape index: {}]   ;;  %s2985_s2 = inlined_call_operand.hbm [shape: bf16[1024,128], index: 2, kind: input, shape index: {}]   ;;  %s2986_s3 = inlined_call_operand.hbm [shape: bf16[1024,128], index: 3, kind: input, shape index: {}]   ;;  %s2987_s4 = inlined_call_operand.vmem [shape: f32[1,128], index: 4, kind: input, shape index: {}]   ;;  %s2988_s5 = inlined_call_operand.hbm [shape: bf16[128,128], index: 5, kind: input, shape index: {}]   ;;  %s2989_s6 = inlined_call_operand.vmem [shape: f32[1,128], index: 6, kind: input, shape index: {}]   ;;  %s2990_s7 = inlined_call_operand.hbm [shape: bf16[128,128], index: 7, kind: input, shape index: {}]   ;;  %s2991_s8 = inlined_call_operand.vmem [shape: f32[1,128], index: 8, kind: input, shape index: {}]   ;;  %s2992_s9 = inlined_call_operand.hbm [shape: bf16[128,128], index: 9, kind: input, shape index: {}]   ;;  %s2993_s10 = inlined_call_operand.vmem [shape: f32[1,128], index: 10, kind: input, shape index: {}]   ;;  %s2994_s11 = inlined_call_operand.hbm [shape: f32[16,128], index: 11, kind: output, shape index: {}]  }
   0x1   :  { %17 = vsyncpa [#allocation6], 0 }
   0x2   :  { %18 = vsyncpa [#allocation9], 0 }
   0x3   :  { %19 = vsyncpa [#allocation12], 0 }
   0x4   :  { %20 = vsyncpa [#allocation4], 0  ;;  %s2748_s17 = smov [#allocation5]   ;;  %s2562_s21 = scalar_lea.hbm %s2984_s1, 1024 }
   0x5   :  { %s38_s18 = sshll.u32 %s2748_s17, 4  ;;  %p2563_p0 = scmp.ne.s32.totalorder %s2984_s1, %s2562_s21  ;;  %s39_s18 = int_to_ptr.vmem [resolvable:$true] %s38_s18 }
   0x6   :  { %p2566_p1 = scmp.lt.u32.totalorder %s2562_s21, %s2984_s1 }
   0x8   :  { %p2568_p2 = pnand %p2566_p1, %p2563_p0 }
   0xa   :  { %2571 = shalt.err (!%p2568_p2)
}
   0xb   :  { %s2572_s26 = scalar_lea.vmem %s39_s18, 1024  ;;  %p2577_p4 = scmp.lt.s32.totalorder %s39_s18, %s39_s18 }
   0xc   :  { %p2573_p3 = scmp.ne.s32.totalorder %s39_s18, %s2572_s26  ;;  %p2578_p5 = scmp.lt.s32.totalorder %s2572_s26, %s2572_s26 }
   0xe   :  { %p2579_p6 = por %p2578_p5, %p2577_p4 }
  0x10   :  { %p2580_p7 = pnand %p2579_p6, %p2573_p3 }
  0x12   :  { %2583 = shalt.err (!%p2580_p7)
}
  0x13   :  { %s2749_s27 = smov 512   ;;  %s2750_s28 = smov 32  }
  0x14   :  { %44 = dma.hbm_to_vmem [thread:$0]  %s2984_s1, 1024, %s39_s18, [#allocation6], %s2749_s27, %s2749_s27, %s2750_s28  }
  0x15   :  { %s2751_s12 = smov [#allocation8]   ;;  %s2752_s14 = smov [#allocation11]  }
  0x16   :  { %s62_s13 = sshll.u32 %s2751_s12, 4  ;;  %s90_s15 = sshll.u32 %s2752_s14, 4  ;;  %s63_s13 = int_to_ptr.vmem [resolvable:$true] %s62_s13  ;;  %s91_s15 = int_to_ptr.vmem [resolvable:$true] %s90_s15 }
  0x17   :  { %s2584_s19 = scalar_lea.hbm %s2986_s3, 8192 }
  0x18   :  { %p2585_p8 = scmp.ne.s32.totalorder %s2986_s3, %s2584_s19  ;;  %p2588_p9 = scmp.lt.u32.totalorder %s2584_s19, %s2986_s3 }
  0x1a   :  { %p2590_p10 = pnand %p2588_p9, %p2585_p8 }
  0x1c   :  { %2593 = shalt.err (!%p2590_p10)
}
  0x1d   :  { %s2594_s1 = scalar_lea.vmem %s63_s13, 8192  ;;  %p2599_p12 = scmp.lt.s32.totalorder %s63_s13, %s63_s13 }
  0x1e   :  { %p2595_p11 = scmp.ne.s32.totalorder %s63_s13, %s2594_s1  ;;  %p2600_p13 = scmp.lt.s32.totalorder %s2594_s1, %s2594_s1 }
  0x20   :  { %p2601_p0 = por %p2600_p13, %p2599_p12 }
  0x22   :  { %p2602_p1 = pnand %p2601_p0, %p2595_p11 }
  0x24   :  { %2605 = shalt.err (!%p2602_p1)
}
  0x25   :  { %s2753_s18 = smov 64   ;;  %s2754_s24 = smov 4  }
  0x26   :  { %68 = dma.hbm_to_vmem [thread:$0]  %s2986_s3, 8192, %s63_s13, [#allocation9], %s2753_s18, %s2753_s18, %s2754_s24  }
  0x27   :  { %s2606_s12 = scalar_lea.hbm %s2990_s7, 1024 }
  0x28   :  { %p2607_p2 = scmp.ne.s32.totalorder %s2990_s7, %s2606_s12  ;;  %p2610_p3 = scmp.lt.u32.totalorder %s2606_s12, %s2990_s7 }
  0x2a   :  { %p2612_p4 = pnand %p2610_p3, %p2607_p2 }
  0x2c   :  { %2615 = shalt.err (!%p2612_p4)
}
  0x2d   :  { %s2616_s20 = scalar_lea.vmem %s91_s15, 1024  ;;  %p2621_p6 = scmp.lt.s32.totalorder %s91_s15, %s91_s15 }
  0x2e   :  { %p2617_p5 = scmp.ne.s32.totalorder %s91_s15, %s2616_s20  ;;  %p2622_p7 = scmp.lt.s32.totalorder %s2616_s20, %s2616_s20 }
  0x30   :  { %p2623_p8 = por %p2622_p7, %p2621_p6 }
  0x32   :  { %p2624_p9 = pnand %p2623_p8, %p2617_p5 }
  0x34   :  { %2627 = shalt.err (!%p2624_p9)
}
  0x35   :  { %96 = dma.hbm_to_vmem [thread:$0]  %s2990_s7, 1024, %s91_s15, [#allocation12], %s2753_s18, %s2753_s18, %s2754_s24  }
  0x36   :  { %s2755_s21 = smov [#allocation2]   ;;  %s2756_s23 = smov [#allocation7]  }
  0x37   :  { %s26_s22 = sshll.u32 %s2755_s21, 4  ;;  %s50_s1 = sshll.u32 %s2756_s23, 4  ;;  %s27_s22 = int_to_ptr.vmem [resolvable:$true] %s26_s22  ;;  %s51_s1 = int_to_ptr.vmem [resolvable:$true] %s50_s1 }
  0x38   :  { %s2628_s29 = scalar_lea.hbm %s2983_s0, 1024 }
  0x39   :  { %p2629_p10 = scmp.ne.s32.totalorder %s2983_s0, %s2628_s29  ;;  %p2632_p11 = scmp.lt.u32.totalorder %s2628_s29, %s2983_s0 }
  0x3b   :  { %p2634_p12 = pnand %p2632_p11, %p2629_p10 }
  0x3d   :  { %2637 = shalt.err (!%p2634_p12)
}
  0x3e   :  { %s2638_s7 = scalar_lea.vmem %s27_s22, 1024  ;;  %p2643_p0 = scmp.lt.s32.totalorder %s27_s22, %s27_s22 }
  0x3f   :  { %p2639_p13 = scmp.ne.s32.totalorder %s27_s22, %s2638_s7  ;;  %p2644_p1 = scmp.lt.s32.totalorder %s2638_s7, %s2638_s7 }
  0x41   :  { %p2645_p2 = por %p2644_p1, %p2643_p0 }
  0x43   :  { %p2646_p3 = pnand %p2645_p2, %p2639_p13 }
  0x45   :  { %2649 = shalt.err (!%p2646_p3)
}
  0x46   :  { %32 = dma.hbm_to_vmem [thread:$0]  %s2983_s0, 1024, %s27_s22, [#allocation3], %s2749_s27, %s2749_s27, %s2750_s28  }
  0x47   :  { %s2650_s3 = scalar_lea.hbm %s2985_s2, 8192 }
  0x48   :  { %p2651_p4 = scmp.ne.s32.totalorder %s2985_s2, %s2650_s3  ;;  %p2654_p5 = scmp.lt.u32.totalorder %s2650_s3, %s2985_s2 }
  0x4a   :  { %p2656_p6 = pnand %p2654_p5, %p2651_p4 }
  0x4c   :  { %2659 = shalt.err (!%p2656_p6)
}
  0x4d   :  { %s2660_s26 = scalar_lea.vmem %s51_s1, 8192  ;;  %p2665_p8 = scmp.lt.s32.totalorder %s51_s1, %s51_s1 }
  0x4e   :  { %p2661_p7 = scmp.ne.s32.totalorder %s51_s1, %s2660_s26  ;;  %p2666_p9 = scmp.lt.s32.totalorder %s2660_s26, %s2660_s26 }
  0x50   :  { %p2667_p10 = por %p2666_p9, %p2665_p8 }
  0x52   :  { %p2668_p11 = pnand %p2667_p10, %p2661_p7 }
  0x54   :  { %2671 = shalt.err (!%p2668_p11)
}
  0x55   :  { %56 = dma.hbm_to_vmem [thread:$0]  %s2985_s2, 8192, %s51_s1, [#allocation6], %s2753_s18, %s2753_s18, %s2754_s24  }
  0x56   :  { %s2757_s28 = smov [#allocation10]   ;;  %s2758_s29 = smov [#allocation13]  }
  0x57   :  { %s76_s22 = sshll.u32 %s2757_s28, 4  ;;  %s104_s30 = sshll.u32 %s2758_s29, 4  ;;  %s77_s22 = int_to_ptr.vmem [resolvable:$true] %s76_s22  ;;  %s105_s30 = int_to_ptr.vmem [resolvable:$true] %s104_s30 }
  0x58   :  { %s2672_s16 = scalar_lea.hbm %s2988_s5, 1024 }
  0x59   :  { %p2673_p12 = scmp.ne.s32.totalorder %s2988_s5, %s2672_s16  ;;  %p2676_p13 = scmp.lt.u32.totalorder %s2672_s16, %s2988_s5 }
  0x5b   :  { %p2678_p0 = pnand %p2676_p13, %p2673_p12 }
  0x5d   :  { %2681 = shalt.err (!%p2678_p0)
}
  0x5e   :  { %s2682_s2 = scalar_lea.vmem %s77_s22, 1024  ;;  %p2687_p2 = scmp.lt.s32.totalorder %s77_s22, %s77_s22 }
  0x5f   :  { %p2683_p1 = scmp.ne.s32.totalorder %s77_s22, %s2682_s2  ;;  %p2688_p3 = scmp.lt.s32.totalorder %s2682_s2, %s2682_s2 }
  0x61   :  { %p2689_p4 = por %p2688_p3, %p2687_p2 }
  0x63   :  { %p2690_p5 = pnand %p2689_p4, %p2683_p1 }
  0x65   :  { %2693 = shalt.err (!%p2690_p5)
}
  0x66   :  { %82 = dma.hbm_to_vmem [thread:$0]  %s2988_s5, 1024, %s77_s22, [#allocation9], %s2753_s18, %s2753_s18, %s2754_s24  }
  0x67   :  { %s2694_s21 = scalar_lea.hbm %s2992_s9, 1024 }
  0x68   :  { %p2695_p6 = scmp.ne.s32.totalorder %s2992_s9, %s2694_s21  ;;  %p2698_p7 = scmp.lt.u32.totalorder %s2694_s21, %s2992_s9 }
  0x6a   :  { %p2700_p8 = pnand %p2698_p7, %p2695_p6 }
  0x6c   :  { %2703 = shalt.err (!%p2700_p8)
}
  0x6d   :  { %s2704_s27 = scalar_lea.vmem %s105_s30, 1024  ;;  %p2709_p10 = scmp.lt.s32.totalorder %s105_s30, %s105_s30 }
  0x6e   :  { %p2705_p9 = scmp.ne.s32.totalorder %s105_s30, %s2704_s27  ;;  %p2710_p11 = scmp.lt.s32.totalorder %s2704_s27, %s2704_s27 }
  0x70   :  { %p2711_p12 = por %p2710_p11, %p2709_p10 }
  0x72   :  { %p2712_p13 = pnand %p2711_p12, %p2705_p9 }
  0x74   :  { %2715 = shalt.err (!%p2712_p13)
}
  0x75   :  { %110 = dma.hbm_to_vmem [thread:$0]  %s2992_s9, 1024, %s105_s30, [#allocation12], %s2753_s18, %s2753_s18, %s2754_s24  }
  0x76   :  { %2738 = dma.done.wait [#allocation3], 1024  }
  0x77   :  { %2739 = vsyncadd [#allocation3], 4294966272 }
  0x78   :  { %2740 = dma.done.wait [#allocation6], 9216  }
  0x79   :  { %2741 = vsyncadd [#allocation6], 4294958080 }
  0x7a   :  { %2742 = dma.done.wait [#allocation9], 9216  }
  0x7b   :  { %2743 = vsyncadd [#allocation9], 4294958080 }
  0x7c   :  { %2744 = dma.done.wait [#allocation12], 2048  }
  0x7d   :  { %2745 = vsyncadd [#allocation12], 4294965248  ;;  %v2410_v0 = vld [vmem:[#allocation8 + $0x40] sm:$0xff]   ;;  %v2414_v4 = vld [vmem:[#allocation8 + $0x48] sm:$0xff]   ;;  %vm2760_vm0 = vmmov 0   ;;  %s2761_s12 = smov [#allocation14]  }
  0x7e   :  { %v2411_v1 = vld [vmem:[#allocation8 + $0xc0] sm:$0xff]   ;;  %2131 = vmatprep.subr.bf16.mxu0 %v2410_v0  ;;  %v2415_v5 = vld [vmem:[#allocation8 + $0xc8] sm:$0xff]   ;;  %v2418_v8 = vld [vmem:[#allocation8 + $0x50] sm:$0xff]   ;;  %s1944_s14 = sshll.u32 %s2761_s12, 4  ;;  %s1945_s14 = int_to_ptr.vmem [resolvable:$true] %s1944_s14 }
  0x7f   :  { %v2412_v2 = vld [vmem:[#allocation8] sm:$0xff]   ;;  %2153 = vmatprep.subr.bf16.mxu1 %v2411_v1  ;;  %v2416_v6 = vld [vmem:[#allocation8 + $0x8] sm:$0xff]   ;;  %v2419_v9 = vld [vmem:[#allocation8 + $0xd0] sm:$0xff]   ;;  %p2721_p1 = scmp.lt.s32.totalorder %s1945_s14, %s1945_s14 }
  0x80   :  { %v2413_v3 = vld [vmem:[#allocation8 + $0x80] sm:$0xff]   ;;  %2132 = vmatpush3.bf16.msra.mxu0 %v2412_v2  ;;  %v2417_v7 = vld [vmem:[#allocation8 + $0x88] sm:$0xff]   ;;  %v2420_v10 = vld [vmem:[#allocation8 + $0x10] sm:$0xff]  }
  0x81   :  { %2154 = vmatpush3.bf16.msra.mxu1 %v2413_v3  ;;  %2133 = vmatprep.subr.bf16.mxu0 %v2414_v4  ;;  %v2421_v11 = vld [vmem:[#allocation8 + $0x90] sm:$0xff]   ;;  %v2422_v12 = vld [vmem:[#allocation8 + $0x58] sm:$0xff]   ;;  %v2426_v16 = vld [vmem:[#allocation8 + $0x60] sm:$0xff]  }
  0x82   :  { %2155 = vmatprep.subr.bf16.mxu1 %v2415_v5  ;;  %v2423_v13 = vld [vmem:[#allocation8 + $0xd8] sm:$0xff]   ;;  %v2427_v17 = vld [vmem:[#allocation8 + $0xe0] sm:$0xff]   ;;  %v2430_v20 = vld [vmem:[#allocation8 + $0x68] sm:$0xff]  }
  0x83   :  { %v2424_v14 = vld [vmem:[#allocation8 + $0x18] sm:$0xff]   ;;  %v2428_v18 = vld [vmem:[#allocation8 + $0x20] sm:$0xff]   ;;  %v2431_v21 = vld [vmem:[#allocation8 + $0xe8] sm:$0xff]  }
  0x84   :  { %2134 = vmatpush3.bf16.msra.mxu0 %v2416_v6  ;;  %v2425_v15 = vld [vmem:[#allocation8 + $0x98] sm:$0xff]   ;;  %v2429_v19 = vld [vmem:[#allocation8 + $0xa0] sm:$0xff]   ;;  %v2432_v22 = vld [vmem:[#allocation8 + $0x28] sm:$0xff]  }
  0x85   :  { %2156 = vmatpush3.bf16.msra.mxu1 %v2417_v7  ;;  %2135 = vmatprep.subr.bf16.mxu0 %v2418_v8  ;;  %v2433_v23 = vld [vmem:[#allocation8 + $0xa8] sm:$0xff]   ;;  %v2434_v24 = vld [vmem:[#allocation8 + $0x70] sm:$0xff]   ;;  %v2438_v28 = vld [vmem:[#allocation8 + $0x78] sm:$0xff]  }
  0x86   :  { %2157 = vmatprep.subr.bf16.mxu1 %v2419_v9  ;;  %v2435_v25 = vld [vmem:[#allocation8 + $0xf0] sm:$0xff]   ;;  %v2439_v29 = vld [vmem:[#allocation8 + $0xf8] sm:$0xff]   ;;  %v271_v32 = vld [vmem:[#allocation5] sm:$0xff] }
  0x87   :  { %v2436_v26 = vld [vmem:[#allocation8 + $0x30] sm:$0xff]   ;;  %v2440_v30 = vld [vmem:[#allocation8 + $0x38] sm:$0xff]   ;;  %v275_v33 = vld [vmem:[#allocation5 + $0x20] sm:$0xff] }
  0x88   :  { %2136 = vmatpush3.bf16.msra.mxu0 %v2420_v10  ;;  %v2437_v27 = vld [vmem:[#allocation8 + $0xb0] sm:$0xff]   ;;  %v2441_v31 = vld [vmem:[#allocation8 + $0xb8] sm:$0xff]   ;;  %v272_v34 = vld [vmem:[#allocation5 + $0x8] sm:$0xff]  ;;  %v1959_v35 = vcombine.low %v271_v32, %v275_v33  ;;  %v1960_v36 = vcombine.high %v271_v32, %v275_v33 }
  0x89   :  { %2158 = vmatpush3.bf16.msra.mxu1 %v2421_v11  ;;  %2137 = vmatprep.subr.bf16.mxu0 %v2422_v12  ;;  %v276_v37 = vld [vmem:[#allocation5 + $0x28] sm:$0xff]  ;;  %v2442_v40 = vld [vmem:[#allocation8 + $0x140] sm:$0xff]   ;;  %v2450_v48 = vld [vmem:[#allocation8 + $0x150] sm:$0xff]  }
  0x8a   :  { %2159 = vmatprep.subr.bf16.mxu1 %v2423_v13  ;;  %v1961_v38 = vcombine.low %v272_v34, %v276_v37  ;;  %v1962_v39 = vcombine.high %v272_v34, %v276_v37  ;;  %863 = vmatprep.mubr.bf16.mxu0 %v1960_v36  ;;  %v2443_v41 = vld [vmem:[#allocation8 + $0x1c0] sm:$0xff]   ;;  %v2446_v44 = vld [vmem:[#allocation8 + $0x148] sm:$0xff]   ;;  %v2451_v49 = vld [vmem:[#allocation8 + $0x1d0] sm:$0xff]  }
  0x8b   :  { %v2444_v42 = vld [vmem:[#allocation8 + $0x100] sm:$0xff]   ;;  %v2447_v45 = vld [vmem:[#allocation8 + $0x1c8] sm:$0xff]   ;;  %v2452_v50 = vld [vmem:[#allocation8 + $0x110] sm:$0xff]  }
  0x8c   :  { %2138 = vmatpush3.bf16.msra.mxu0 %v2424_v14  ;;  %904 = vmatprep.mubr.bf16.mxu1 %v1962_v39  ;;  %v2445_v43 = vld [vmem:[#allocation8 + $0x180] sm:$0xff]   ;;  %v2448_v46 = vld [vmem:[#allocation8 + $0x108] sm:$0xff]   ;;  %v2453_v51 = vld [vmem:[#allocation8 + $0x190] sm:$0xff]  }
  0x8d   :  { %2160 = vmatpush3.bf16.msra.mxu1 %v2425_v15  ;;  %2139 = vmatprep.subr.bf16.mxu0 %v2426_v16  ;;  %v2449_v47 = vld [vmem:[#allocation8 + $0x188] sm:$0xff]   ;;  %v2454_v52 = vld [vmem:[#allocation8 + $0x158] sm:$0xff]   ;;  %v2458_v56 = vld [vmem:[#allocation8 + $0x160] sm:$0xff]  }
  0x8e   :  { %2161 = vmatprep.subr.bf16.mxu1 %v2427_v17  ;;  %v2455_v53 = vld [vmem:[#allocation8 + $0x1d8] sm:$0xff]   ;;  %v2459_v57 = vld [vmem:[#allocation8 + $0x1e0] sm:$0xff]   ;;  %v2462_v60 = vld [vmem:[#allocation8 + $0x168] sm:$0xff]  }
  0x8f   :  { %v2456_v54 = vld [vmem:[#allocation8 + $0x118] sm:$0xff]   ;;  %v2460_v58 = vld [vmem:[#allocation8 + $0x120] sm:$0xff]   ;;  %v2463_v61 = vld [vmem:[#allocation8 + $0x1e8] sm:$0xff]  }
  0x90   :  { %2140 = vmatpush3.bf16.msra.mxu0 %v2428_v18  ;;  %v2457_v55 = vld [vmem:[#allocation8 + $0x198] sm:$0xff]   ;;  %v2461_v59 = vld [vmem:[#allocation8 + $0x1a0] sm:$0xff]   ;;  %v2464_v62 = vld [vmem:[#allocation8 + $0x128] sm:$0xff]  }
  0x91   :  { %2162 = vmatpush3.bf16.msra.mxu1 %v2429_v19  ;;  %2141 = vmatprep.subr.bf16.mxu0 %v2430_v20  ;;  %v2465_v63 = vld [vmem:[#allocation8 + $0x1a8] sm:$0xff]   ;;  %v2466_v0 = vld [vmem:[#allocation8 + $0x170] sm:$0xff]   ;;  %v2470_v4 = vld [vmem:[#allocation8 + $0x178] sm:$0xff]  }
  0x92   :  { %2163 = vmatprep.subr.bf16.mxu1 %v2431_v21  ;;  %v2467_v1 = vld [vmem:[#allocation8 + $0x1f0] sm:$0xff]   ;;  %v2471_v5 = vld [vmem:[#allocation8 + $0x1f8] sm:$0xff]   ;;  %v2474_v16 = vld [vmem:[#allocation7 + $0x40] sm:$0xff]  }
  0x93   :  { %v2468_v2 = vld [vmem:[#allocation8 + $0x130] sm:$0xff]   ;;  %v2472_v6 = vld [vmem:[#allocation8 + $0x138] sm:$0xff]   ;;  %v2475_v17 = vld [vmem:[#allocation7 + $0xc0] sm:$0xff]  }
  0x94   :  { %2142 = vmatpush3.bf16.msra.mxu0 %v2432_v22  ;;  %v2469_v3 = vld [vmem:[#allocation8 + $0x1b0] sm:$0xff]   ;;  %v2473_v7 = vld [vmem:[#allocation8 + $0x1b8] sm:$0xff]   ;;  %v2476_v18 = vld [vmem:[#allocation7] sm:$0xff]  }
  0x95   :  { %2164 = vmatpush3.bf16.msra.mxu1 %v2433_v23  ;;  %2143 = vmatprep.subr.bf16.mxu0 %v2434_v24  ;;  %v273_v8 = vld [vmem:[#allocation5 + $0x10] sm:$0xff]  ;;  %v274_v12 = vld [vmem:[#allocation5 + $0x18] sm:$0xff]  ;;  %v2477_v19 = vld [vmem:[#allocation7 + $0x80] sm:$0xff]  }
  0x96   :  { %2165 = vmatprep.subr.bf16.mxu1 %v2435_v25  ;;  %v277_v9 = vld [vmem:[#allocation5 + $0x30] sm:$0xff]  ;;  %v278_v13 = vld [vmem:[#allocation5 + $0x38] sm:$0xff]  ;;  %v2478_v20 = vld [vmem:[#allocation7 + $0x48] sm:$0xff]  }
  0x97   :  { %v1963_v10 = vcombine.low %v273_v8, %v277_v9  ;;  %v1964_v11 = vcombine.high %v273_v8, %v277_v9  ;;  %v1965_v14 = vcombine.low %v274_v12, %v278_v13  ;;  %v1966_v15 = vcombine.high %v274_v12, %v278_v13  ;;  %v2479_v21 = vld [vmem:[#allocation7 + $0xc8] sm:$0xff]   ;;  %v2482_v24 = vld [vmem:[#allocation7 + $0x50] sm:$0xff]   ;;  %v2490_v32 = vld [vmem:[#allocation7 + $0x60] sm:$0xff]  }
  0x98   :  { %2144 = vmatpush3.bf16.msra.mxu0 %v2436_v26  ;;  %v2480_v22 = vld [vmem:[#allocation7 + $0x8] sm:$0xff]   ;;  %v2483_v25 = vld [vmem:[#allocation7 + $0xd0] sm:$0xff]   ;;  %v2491_v33 = vld [vmem:[#allocation7 + $0xe0] sm:$0xff]  }
  0x99   :  { %2166 = vmatpush3.bf16.msra.mxu1 %v2437_v27  ;;  %2145 = vmatprep.subr.bf16.mxu0 %v2438_v28  ;;  %v2481_v23 = vld [vmem:[#allocation7 + $0x88] sm:$0xff]   ;;  %v2484_v26 = vld [vmem:[#allocation7 + $0x10] sm:$0xff]   ;;  %v2486_v28 = vld [vmem:[#allocation7 + $0x58] sm:$0xff]  }
  0x9a   :  { %2167 = vmatprep.subr.bf16.mxu1 %v2439_v29  ;;  %v2485_v27 = vld [vmem:[#allocation7 + $0x90] sm:$0xff]   ;;  %v2487_v29 = vld [vmem:[#allocation7 + $0xd8] sm:$0xff]   ;;  %v2492_v34 = vld [vmem:[#allocation7 + $0x20] sm:$0xff]  }
  0x9b   :  { %v2494_v36 = vld [vmem:[#allocation7 + $0x68] sm:$0xff]   ;;  %v2522_v8 = vld [vmem:[#allocation7 + $0x160] sm:$0xff]  }
  0x9c   :  { %2146 = vmatpush3.bf16.msra.mxu0 %v2440_v30  ;;  %v2488_v30 = vld [vmem:[#allocation7 + $0x18] sm:$0xff]   ;;  %v2495_v37 = vld [vmem:[#allocation7 + $0xe8] sm:$0xff]   ;;  %v2523_v9 = vld [vmem:[#allocation7 + $0x1e0] sm:$0xff]  }
  0x9d   :  { %2168 = vmatpush3.bf16.msra.mxu1 %v2441_v31  ;;  %2175 = vmatprep.subr.bf16.mxu0 %v2442_v40  ;;  %v2489_v31 = vld [vmem:[#allocation7 + $0x98] sm:$0xff]   ;;  %v2497_v39 = vld [vmem:[#allocation7 + $0xa8] sm:$0xff]   ;;  %v2498_v40 = vld [vmem:[#allocation7 + $0x70] sm:$0xff]  }
  0x9e   :  { %2197 = vmatprep.subr.bf16.mxu1 %v2443_v41  ;;  %v2499_v41 = vld [vmem:[#allocation7 + $0xf0] sm:$0xff]   ;;  %v2526_v12 = vld [vmem:[#allocation7 + $0x168] sm:$0xff]  }
  0x9f   :  { %864 = vmatmul.mubr.bf16.vlgmr.msra.gmra.mrb[0].mxu0 %v1959_v35  ;;  %v2493_v35 = vld [vmem:[#allocation7 + $0xa0] sm:$0xff]   ;;  %v2527_v13 = vld [vmem:[#allocation7 + $0x1e8] sm:$0xff]  }
  0xa0   :  { %905 = vmatmul.mubr.bf16.vlgmr.msra.gmra.mrb[0].mxu1 %v1961_v38  ;;  %2176 = vmatpush3.bf16.msra.mxu0 %v2444_v42  ;;  %v2496_v38 = vld [vmem:[#allocation7 + $0x28] sm:$0xff]   ;;  %v2500_v42 = vld [vmem:[#allocation7 + $0x30] sm:$0xff]  }
  0xa1   :  { %2198 = vmatpush3.bf16.msra.mxu1 %v2445_v43  ;;  %2177 = vmatprep.subr.bf16.mxu0 %v2446_v44  ;;  %v2501_v43 = vld [vmem:[#allocation7 + $0xb0] sm:$0xff]   ;;  %v2502_v44 = vld [vmem:[#allocation7 + $0x78] sm:$0xff]  }
  0xa2   :  { %2199 = vmatprep.subr.bf16.mxu1 %v2447_v45  ;;  %945 = vmatprep.mubr.bf16.mxu0 %v1964_v11  ;;  %v2503_v45 = vld [vmem:[#allocation7 + $0xf8] sm:$0xff]   ;;  %v2525_v11 = vld [vmem:[#allocation7 + $0x1a0] sm:$0xff]  }
  0xa3   :  { %986 = vmatprep.mubr.bf16.mxu1 %v1966_v15  ;;  %v2529_v15 = vld [vmem:[#allocation7 + $0x1a8] sm:$0xff]  }
  0xa4   :  { %2178 = vmatpush3.bf16.msra.mxu0 %v2448_v46  ;;  %v2504_v46 = vld [vmem:[#allocation7 + $0x38] sm:$0xff]  }
  0xa5   :  { %2200 = vmatpush3.bf16.msra.mxu1 %v2449_v47  ;;  %2179 = vmatprep.subr.bf16.mxu0 %v2450_v48  ;;  %v2505_v47 = vld [vmem:[#allocation7 + $0xb8] sm:$0xff]   ;;  %v135_v48 = vld [vmem:[#allocation2] sm:$0xff] }
  0xa6   :  { %2201 = vmatprep.subr.bf16.mxu1 %v2451_v49  ;;  %v139_v49 = vld [vmem:[#allocation2 + $0x20] sm:$0xff] }
  0xa8   :  { %2180 = vmatpush3.bf16.msra.mxu0 %v2452_v50  ;;  %v136_v50 = vld [vmem:[#allocation2 + $0x8] sm:$0xff] }
  0xa9   :  { %2202 = vmatpush3.bf16.msra.mxu1 %v2453_v51  ;;  %2181 = vmatprep.subr.bf16.mxu0 %v2454_v52  ;;  %v140_v51 = vld [vmem:[#allocation2 + $0x28] sm:$0xff]  ;;  %v2031_v52 = vcombine.low %v135_v48, %v139_v49 }
  0xaa   :  { %2203 = vmatprep.subr.bf16.mxu1 %v2455_v53  ;;  %v2032_v53 = vcombine.high %v135_v48, %v139_v49 }
  0xac   :  { %2182 = vmatpush3.bf16.msra.mxu0 %v2456_v54  ;;  %v2033_v54 = vcombine.low %v136_v50, %v140_v51 }
  0xad   :  { %2204 = vmatpush3.bf16.msra.mxu1 %v2457_v55  ;;  %2183 = vmatprep.subr.bf16.mxu0 %v2458_v56  ;;  %v2034_v55 = vcombine.high %v136_v50, %v140_v51  ;;  %v2506_v56 = vld [vmem:[#allocation7 + $0x140] sm:$0xff]  }
  0xae   :  { %2205 = vmatprep.subr.bf16.mxu1 %v2459_v57  ;;  %v2507_v57 = vld [vmem:[#allocation7 + $0x1c0] sm:$0xff]  }
  0xaf   :  { %v2550_v51 = vld [vmem:[#allocation11 + $0x20] sm:$0xff]  }
  0xb0   :  { %2184 = vmatpush3.bf16.msra.mxu0 %v2460_v58  ;;  %v2508_v58 = vld [vmem:[#allocation7 + $0x100] sm:$0xff]  }
  0xb1   :  { %2206 = vmatpush3.bf16.msra.mxu1 %v2461_v59  ;;  %2185 = vmatprep.subr.bf16.mxu0 %v2462_v60  ;;  %v2509_v59 = vld [vmem:[#allocation7 + $0x180] sm:$0xff]   ;;  %v2510_v60 = vld [vmem:[#allocation7 + $0x148] sm:$0xff]  }
  0xb2   :  { %2207 = vmatprep.subr.bf16.mxu1 %v2463_v61  ;;  %v2511_v61 = vld [vmem:[#allocation7 + $0x1c8] sm:$0xff]  }
  0xb4   :  { %2186 = vmatpush3.bf16.msra.mxu0 %v2464_v62  ;;  %v2512_v62 = vld [vmem:[#allocation7 + $0x108] sm:$0xff]  }
  0xb5   :  { %2208 = vmatpush3.bf16.msra.mxu1 %v2465_v63  ;;  %2187 = vmatprep.subr.bf16.mxu0 %v2466_v0  ;;  %v2513_v63 = vld [vmem:[#allocation7 + $0x188] sm:$0xff]   ;;  %v2514_v0 = vld [vmem:[#allocation7 + $0x150] sm:$0xff]  }
  0xb6   :  { %2209 = vmatprep.subr.bf16.mxu1 %v2467_v1  ;;  %v2515_v1 = vld [vmem:[#allocation7 + $0x1d0] sm:$0xff]  }
  0xb8   :  { %2188 = vmatpush3.bf16.msra.mxu0 %v2468_v2  ;;  %v2516_v2 = vld [vmem:[#allocation7 + $0x110] sm:$0xff]  }
  0xb9   :  { %2210 = vmatpush3.bf16.msra.mxu1 %v2469_v3  ;;  %2189 = vmatprep.subr.bf16.mxu0 %v2470_v4  ;;  %v2517_v3 = vld [vmem:[#allocation7 + $0x190] sm:$0xff]   ;;  %v2518_v4 = vld [vmem:[#allocation7 + $0x158] sm:$0xff]  }
  0xba   :  { %2211 = vmatprep.subr.bf16.mxu1 %v2471_v5  ;;  %v2519_v5 = vld [vmem:[#allocation7 + $0x1d8] sm:$0xff]  }
  0xbc   :  { %2190 = vmatpush3.bf16.msra.mxu0 %v2472_v6  ;;  %v2520_v6 = vld [vmem:[#allocation7 + $0x118] sm:$0xff]  }
  0xbd   :  { %2212 = vmatpush3.bf16.msra.mxu1 %v2473_v7  ;;  %2219 = vmatprep.subr.bf16.mxu0 %v2474_v16  ;;  %v2521_v7 = vld [vmem:[#allocation7 + $0x198] sm:$0xff]   ;;  %v2530_v16 = vld [vmem:[#allocation7 + $0x170] sm:$0xff]  }
  0xbe   :  { %2241 = vmatprep.subr.bf16.mxu1 %v2475_v17  ;;  %v2531_v17 = vld [vmem:[#allocation7 + $0x1f0] sm:$0xff]  }
  0xbf   :  { %946 = vmatmul.mubr.bf16.vlgmr.msra.gmra.mrb[4].mxu0 %v1963_v10  ;;  %v2524_v10 = vld [vmem:[#allocation7 + $0x120] sm:$0xff]  }
  0xc0   :  { %987 = vmatmul.mubr.bf16.vlgmr.msra.gmra.mrb[4].mxu1 %v1965_v14  ;;  %2220 = vmatpush3.bf16.msra.mxu0 %v2476_v18  ;;  %v2528_v14 = vld [vmem:[#allocation7 + $0x128] sm:$0xff]   ;;  %v2532_v18 = vld [vmem:[#allocation7 + $0x130] sm:$0xff]  }
  0xc1   :  { %2242 = vmatpush3.bf16.msra.mxu1 %v2477_v19  ;;  %2221 = vmatprep.subr.bf16.mxu0 %v2478_v20  ;;  %v2533_v19 = vld [vmem:[#allocation7 + $0x1b0] sm:$0xff]   ;;  %v2534_v20 = vld [vmem:[#allocation7 + $0x178] sm:$0xff]  }
  0xc2   :  { %2243 = vmatprep.subr.bf16.mxu1 %v2479_v21  ;;  %1451 = vmatprep.mubr.bf16.mxu0 %v2032_v53  ;;  %v2535_v21 = vld [vmem:[#allocation7 + $0x1f8] sm:$0xff]  }
  0xc3   :  { %1492 = vmatprep.mubr.bf16.mxu1 %v2034_v55 }
  0xc4   :  { %2222 = vmatpush3.bf16.msra.mxu0 %v2480_v22  ;;  %v2536_v22 = vld [vmem:[#allocation7 + $0x138] sm:$0xff]  }
  0xc5   :  { %2244 = vmatpush3.bf16.msra.mxu1 %v2481_v23  ;;  %2223 = vmatprep.subr.bf16.mxu0 %v2482_v24  ;;  %v2537_v23 = vld [vmem:[#allocation7 + $0x1b8] sm:$0xff]   ;;  %v137_v24 = vld [vmem:[#allocation2 + $0x10] sm:$0xff] }
  0xc6   :  { %2245 = vmatprep.subr.bf16.mxu1 %v2483_v25  ;;  %v141_v25 = vld [vmem:[#allocation2 + $0x30] sm:$0xff] }
  0xc8   :  { %2224 = vmatpush3.bf16.msra.mxu0 %v2484_v26  ;;  %v138_v26 = vld [vmem:[#allocation2 + $0x18] sm:$0xff] }
  0xc9   :  { %2246 = vmatpush3.bf16.msra.mxu1 %v2485_v27  ;;  %2225 = vmatprep.subr.bf16.mxu0 %v2486_v28  ;;  %v2035_v27 = vcombine.low %v137_v24, %v141_v25  ;;  %v2036_v28 = vcombine.high %v137_v24, %v141_v25 }
  0xca   :  { %2247 = vmatprep.subr.bf16.mxu1 %v2487_v29  ;;  %v142_v29 = vld [vmem:[#allocation2 + $0x38] sm:$0xff] }
  0xcc   :  { %2226 = vmatpush3.bf16.msra.mxu0 %v2488_v30  ;;  %v2037_v30 = vcombine.low %v138_v26, %v142_v29 }
  0xcd   :  { %2248 = vmatpush3.bf16.msra.mxu1 %v2489_v31  ;;  %2227 = vmatprep.subr.bf16.mxu0 %v2490_v32  ;;  %v2038_v31 = vcombine.high %v138_v26, %v142_v29  ;;  %v2538_v32 = vld [vmem:[#allocation10] sm:$0xff]  }
  0xce   :  { %2249 = vmatprep.subr.bf16.mxu1 %v2491_v33  ;;  %v2759_v33 = vmov 0.0  }
  0xd0   :  { %2228 = vmatpush3.bf16.msra.mxu0 %v2492_v34  ;;  %v2539_v34 = vld [vmem:[#allocation10 + $0x8] sm:$0xff]  }
  0xd1   :  { %2250 = vmatpush3.bf16.msra.mxu1 %v2493_v35  ;;  %2229 = vmatprep.subr.bf16.mxu0 %v2494_v36  ;;  %v2540_v35 = vld [vmem:[#allocation10 + $0x10] sm:$0xff]   ;;  %v2541_v36 = vld [vmem:[#allocation10 + $0x18] sm:$0xff]  }
  0xd2   :  { %2251 = vmatprep.subr.bf16.mxu1 %v2495_v37  ;;  %v2542_v37 = vld [vmem:[#allocation10 + $0x20] sm:$0xff]  }
  0xd4   :  { %2230 = vmatpush3.bf16.msra.mxu0 %v2496_v38  ;;  %v2543_v38 = vld [vmem:[#allocation10 + $0x28] sm:$0xff]  }
  0xd5   :  { %2252 = vmatpush3.bf16.msra.mxu1 %v2497_v39  ;;  %2231 = vmatprep.subr.bf16.mxu0 %v2498_v40  ;;  %v2544_v39 = vld [vmem:[#allocation10 + $0x30] sm:$0xff]   ;;  %v2545_v40 = vld [vmem:[#allocation10 + $0x38] sm:$0xff]  }
  0xd6   :  { %2253 = vmatprep.subr.bf16.mxu1 %v2499_v41  ;;  %v2546_v41 = vld [vmem:[#allocation11] sm:$0xff]  }
  0xd8   :  { %2232 = vmatpush3.bf16.msra.mxu0 %v2500_v42  ;;  %v2547_v42 = vld [vmem:[#allocation11 + $0x8] sm:$0xff]  }
  0xd9   :  { %2254 = vmatpush3.bf16.msra.mxu1 %v2501_v43  ;;  %2233 = vmatprep.subr.bf16.mxu0 %v2502_v44  ;;  %v2548_v43 = vld [vmem:[#allocation11 + $0x10] sm:$0xff]   ;;  %v2549_v44 = vld [vmem:[#allocation11 + $0x18] sm:$0xff]  }
  0xda   :  { %2255 = vmatprep.subr.bf16.mxu1 %v2503_v45 }
  0xdc   :  { %2234 = vmatpush3.bf16.msra.mxu0 %v2504_v46 }
  0xdd   :  { %2256 = vmatpush3.bf16.msra.mxu1 %v2505_v47  ;;  %2263 = vmatprep.subr.bf16.mxu0 %v2506_v56 }
  0xde   :  { %2285 = vmatprep.subr.bf16.mxu1 %v2507_v57 }
  0xdf   :  { %1452 = vmatmul.mubr.bf16.vlgmr.msra.gmra.mrb[8].mxu0 %v2031_v52 }
  0xe0   :  { %1493 = vmatmul.mubr.bf16.vlgmr.msra.gmra.mrb[8].mxu1 %v2033_v54  ;;  %2264 = vmatpush3.bf16.msra.mxu0 %v2508_v58 }
  0xe1   :  { %2286 = vmatpush3.bf16.msra.mxu1 %v2509_v59  ;;  %2265 = vmatprep.subr.bf16.mxu0 %v2510_v60  ;;  %v2551_v59 = vld [vmem:[#allocation11 + $0x28] sm:$0xff]  }
  0xe2   :  { %2287 = vmatprep.subr.bf16.mxu1 %v2511_v61  ;;  %1533 = vmatprep.mubr.bf16.mxu0 %v2036_v28 }
  0xe3   :  { %1574 = vmatprep.mubr.bf16.mxu1 %v2038_v31 }
  0xe4   :  { %2266 = vmatpush3.bf16.msra.mxu0 %v2512_v62 }
  0xe5   :  { %2288 = vmatpush3.bf16.msra.mxu1 %v2513_v63  ;;  %2267 = vmatprep.subr.bf16.mxu0 %v2514_v0 }
  0xe6   :  { %2289 = vmatprep.subr.bf16.mxu1 %v2515_v1 }
  0xe8   :  { %2268 = vmatpush3.bf16.msra.mxu0 %v2516_v2 }
  0xe9   :  { %2290 = vmatpush3.bf16.msra.mxu1 %v2517_v3  ;;  %2269 = vmatprep.subr.bf16.mxu0 %v2518_v4 }
  0xea   :  { %2291 = vmatprep.subr.bf16.mxu1 %v2519_v5 }
  0xec   :  { %2270 = vmatpush3.bf16.msra.mxu0 %v2520_v6 }
  0xed   :  { %2292 = vmatpush3.bf16.msra.mxu1 %v2521_v7  ;;  %2271 = vmatprep.subr.bf16.mxu0 %v2522_v8 }
  0xee   :  { %2293 = vmatprep.subr.bf16.mxu1 %v2523_v9 }
  0xf0   :  { %2272 = vmatpush3.bf16.msra.mxu0 %v2524_v10 }
  0xf1   :  { %2294 = vmatpush3.bf16.msra.mxu1 %v2525_v11  ;;  %2273 = vmatprep.subr.bf16.mxu0 %v2526_v12 }
  0xf2   :  { %2295 = vmatprep.subr.bf16.mxu1 %v2527_v13 }
  0xf4   :  { %2274 = vmatpush3.bf16.msra.mxu0 %v2528_v14 }
  0xf5   :  { %2296 = vmatpush3.bf16.msra.mxu1 %v2529_v15  ;;  %2275 = vmatprep.subr.bf16.mxu0 %v2530_v16 }
  0xf6   :  { %2297 = vmatprep.subr.bf16.mxu1 %v2531_v17 }
  0xf8   :  { %2276 = vmatpush3.bf16.msra.mxu0 %v2532_v18 }
  0xf9   :  { %2298 = vmatpush3.bf16.msra.mxu1 %v2533_v19  ;;  %2277 = vmatprep.subr.bf16.mxu0 %v2534_v20 }
  0xfa   :  { %2299 = vmatprep.subr.bf16.mxu1 %v2535_v21 }
  0xfc   :  { %2278 = vmatpush3.bf16.msra.mxu0 %v2536_v22 }
  0xfd   :  { %2300 = vmatpush3.bf16.msra.mxu1 %v2537_v23  ;;  %2334 = vmatprep.subr.bf16.mxu0 %v2759_v33 }
  0xfe   :  { %2354 = vmatprep.subr.bf16.mxu1 %v2759_v33 }
  0xff   :  { %1534 = vmatmul.mubr.bf16.vlgmr.msra.gmra.mrb[12].mxu0 %v2035_v27 }
 0x100   :  { %1575 = vmatmul.mubr.bf16.vlgmr.msra.gmra.mrb[12].mxu1 %v2037_v30  ;;  %2335 = vmatpush3.bf16.msra.mxu0 %v2538_v32 }
 0x101   :  { %2336 = vmatprep.subr.bf16.mxu0 %v2759_v33  ;;  %2350 = vmatprep.mubr.msk.bf16.mxu0 %vm2760_vm0, %v2759_v33 }
 0x102   :  { %2370 = vmatprep.mubr.msk.bf16.mxu1 %vm2760_vm0, %v2759_v33  ;;  %2355 = vmatpush3.bf16.msra.mxu1 %v2546_v41 }
 0x103   :  { %2356 = vmatprep.subr.bf16.mxu1 %v2759_v33 }
 0x104   :  { %2337 = vmatpush3.bf16.msra.mxu0 %v2539_v34 }
 0x105   :  { %2338 = vmatprep.subr.bf16.mxu0 %v2759_v33 }
 0x106   :  { %2357 = vmatpush3.bf16.msra.mxu1 %v2547_v42  ;;  %v2103_v42 = vld [vmem:[%s2987_s4] ss:$0 sm:$0xff] }
 0x107   :  { %2358 = vmatprep.subr.bf16.mxu1 %v2759_v33 }
 0x108   :  { %2339 = vmatpush3.bf16.msra.mxu0 %v2540_v35 }
 0x109   :  { %2340 = vmatprep.subr.bf16.mxu0 %v2759_v33 }
 0x10a   :  { %2359 = vmatpush3.bf16.msra.mxu1 %v2548_v43 }
 0x10b   :  { %2360 = vmatprep.subr.bf16.mxu1 %v2759_v33 }
 0x10c   :  { %2341 = vmatpush3.bf16.msra.mxu0 %v2541_v36 }
 0x10d   :  { %2342 = vmatprep.subr.bf16.mxu0 %v2759_v33 }
 0x10e   :  { %2361 = vmatpush3.bf16.msra.mxu1 %v2549_v44 }
 0x10f   :  { %2362 = vmatprep.subr.bf16.mxu1 %v2759_v33 }
 0x110   :  { %2343 = vmatpush3.bf16.msra.mxu0 %v2542_v37 }
 0x111   :  { %2344 = vmatprep.subr.bf16.mxu0 %v2759_v33 }
 0x112   :  { %2363 = vmatpush3.bf16.msra.mxu1 %v2550_v51 }
 0x113   :  { %2364 = vmatprep.subr.bf16.mxu1 %v2759_v33 }
 0x114   :  { %2345 = vmatpush3.bf16.msra.mxu0 %v2543_v38 }
 0x115   :  { %2346 = vmatprep.subr.bf16.mxu0 %v2759_v33 }
 0x116   :  { %2365 = vmatpush3.bf16.msra.mxu1 %v2551_v59  ;;  %v2559_v59 = vld [vmem:[#allocation13 + $0x28] sm:$0xff]  }
 0x117   :  { %2366 = vmatprep.subr.bf16.mxu1 %v2759_v33 }
 0x118   :  { %2347 = vmatpush3.bf16.msra.mxu0 %v2544_v39 }
 0x119   :  { %2348 = vmatprep.subr.bf16.mxu0 %v2759_v33 }
 0x11c   :  { %2349 = vmatpush3.bf16.msra.mxu0 %v2545_v40 }
 0x11d   :  { %2374 = vmatprep.subr.bf16.mxu0 %v2759_v33 }
 0x172   :  { %v2147_v45 = vpop.f32.mrb[0].mxu0 }
 0x173   :  { %v2169_v46 = vpop.f32.mrb[0].mxu1  ;;  %v2148_v47 = vpop.f32.mrb[1].mxu0 }
 0x174   :  { %v2149_v48 = vadd.f32 %v2148_v47, %v2147_v45  ;;  %v2170_v49 = vpop.f32.mrb[1].mxu1  ;;  %v2150_v50 = vpop.f32.mrb[2].mxu0 }
 0x175   :  { %v2171_v52 = vadd.f32 %v2170_v49, %v2169_v46  ;;  %v2172_v53 = vpop.f32.mrb[2].mxu1  ;;  %v2151_v54 = vpop.f32.mrb[3].mxu0 }
 0x176   :  { %v2152_v55 = vadd.f32 %v2151_v54, %v2150_v50  ;;  %v2173_v56 = vpop.f32.mrb[3].mxu1  ;;  %v2554_v54 = vld [vmem:[#allocation13] sm:$0xff]  }
 0x177   :  { %v907_v57 = vadd.f32 %v2171_v52, %v2149_v48  ;;  %v2174_v58 = vadd.f32 %v2173_v56, %v2172_v53  ;;  %v2552_v52 = vld [vmem:[#allocation11 + $0x30] sm:$0xff]   ;;  %v2553_v53 = vld [vmem:[#allocation11 + $0x38] sm:$0xff]  }
 0x178   :  { %2367 = vmatpush3.bf16.msra.mxu1 %v2552_v52  ;;  %v2556_v56 = vld [vmem:[#allocation13 + $0x10] sm:$0xff]  }
 0x179   :  { %v910_v60 = vadd.f32 %v2174_v58, %v2152_v55  ;;  %2368 = vmatprep.subr.bf16.mxu1 %v2759_v33  ;;  %v2555_v55 = vld [vmem:[#allocation13 + $0x8] sm:$0xff]   ;;  %v2558_v58 = vld [vmem:[#allocation13 + $0x20] sm:$0xff]  }
 0x17c   :  { %2369 = vmatpush3.bf16.msra.mxu1 %v2553_v53 }
 0x192   :  { %v2191_v61 = vpop.f32.mrb[4].mxu0 }
 0x193   :  { %v2213_v62 = vpop.f32.mrb[4].mxu1  ;;  %v2192_v63 = vpop.f32.mrb[5].mxu0 }
 0x194   :  { %v2193_v0 = vadd.f32 %v2192_v63, %v2191_v61  ;;  %v2214_v1 = vpop.f32.mrb[5].mxu1  ;;  %v2194_v2 = vpop.f32.mrb[6].mxu0 }
 0x195   :  { %v2215_v3 = vadd.f32 %v2214_v1, %v2213_v62  ;;  %v2216_v4 = vpop.f32.mrb[6].mxu1  ;;  %v2195_v5 = vpop.f32.mrb[7].mxu0 }
 0x196   :  { %v948_v6 = vadd.f32 %v2193_v0, %v907_v57  ;;  %v2196_v7 = vadd.f32 %v2195_v5, %v2194_v2  ;;  %v2217_v8 = vpop.f32.mrb[7].mxu1  ;;  %v2557_v57 = vld [vmem:[#allocation13 + $0x18] sm:$0xff]  }
 0x197   :  { %v2218_v9 = vadd.f32 %v2217_v8, %v2216_v4  ;;  %v2113_v8 = vld [vmem:[%s2991_s8] ss:$0 sm:$0xff]  ;;  %s2716_s8 = scalar_lea.vmem %s1945_s14, 256 }
 0x198   :  { %v989_v10 = vadd.f32 %v2215_v3, %v948_v6  ;;  %v951_v11 = vadd.f32 %v2196_v7, %v910_v60  ;;  %v2104_v60 = vld [vmem:[%s2989_s6] ss:$0 sm:$0xff]  ;;  %v2560_v6 = vld [vmem:[#allocation13 + $0x30] sm:$0xff]   ;;  %v2561_v7 = vld [vmem:[#allocation13 + $0x38] sm:$0xff]   ;;  %p2717_p0 = scmp.ne.s32.totalorder %s1945_s14, %s2716_s8  ;;  %p2722_p2 = scmp.lt.s32.totalorder %s2716_s8, %s2716_s8 }
 0x19a   :  { %v992_v12 = vadd.f32 %v2218_v9, %v951_v11  ;;  %p2723_p3 = por %p2722_p2, %p2721_p1 }
 0x19c   :  { %p2724_p4 = pnand %p2723_p3, %p2717_p0 }
 0x1b2   :  { %v2235_v13 = vpop.f32.mrb[8].mxu0 }
 0x1b3   :  { %v2257_v14 = vpop.f32.mrb[8].mxu1  ;;  %v2236_v15 = vpop.f32.mrb[9].mxu0 }
 0x1b4   :  { %v2258_v16 = vpop.f32.mrb[9].mxu1  ;;  %v2237_v17 = vadd.f32 %v2236_v15, %v2235_v13  ;;  %v2238_v19 = vpop.f32.mrb[10].mxu0 }
 0x1b5   :  { %v2259_v18 = vadd.f32 %v2258_v16, %v2257_v14  ;;  %v2260_v20 = vpop.f32.mrb[10].mxu1  ;;  %v2239_v21 = vpop.f32.mrb[11].mxu0 }
 0x1b6   :  { %v2261_v22 = vpop.f32.mrb[11].mxu1  ;;  %v1454_v23 = vadd.f32 %v2237_v17, %v989_v10  ;;  %v2240_v24 = vadd.f32 %v2239_v21, %v2238_v19 }
 0x1b7   :  { %v2262_v25 = vadd.f32 %v2261_v22, %v2260_v20 }
 0x1b8   :  { %v1495_v26 = vadd.f32 %v2259_v18, %v1454_v23  ;;  %v1457_v27 = vadd.f32 %v2240_v24, %v992_v12 }
 0x1ba   :  { %v1498_v28 = vadd.f32 %v2262_v25, %v1457_v27 }
 0x1d2   :  { %v2279_v29 = vpop.f32.mrb[12].mxu0 }
 0x1d3   :  { %v2301_v30 = vpop.f32.mrb[12].mxu1  ;;  %v2280_v31 = vpop.f32.mrb[13].mxu0 }
 0x1d4   :  { %v2281_v32 = vadd.f32 %v2280_v31, %v2279_v29  ;;  %v2302_v34 = vpop.f32.mrb[13].mxu1  ;;  %v2282_v35 = vpop.f32.mrb[14].mxu0 }
 0x1d5   :  { %v2303_v36 = vadd.f32 %v2302_v34, %v2301_v30  ;;  %v2304_v37 = vpop.f32.mrb[14].mxu1  ;;  %v2283_v38 = vpop.f32.mrb[15].mxu0 }
 0x1d6   :  { %v1536_v39 = vadd.f32 %v2281_v32, %v1495_v26  ;;  %v2284_v40 = vadd.f32 %v2283_v38, %v2282_v35  ;;  %v2305_v41 = vpop.f32.mrb[15].mxu1 }
 0x1d7   :  { %v2306_v43 = vadd.f32 %v2305_v41, %v2304_v37 }
 0x1d8   :  { %v1577_v44 = vadd.f32 %v2303_v36, %v1536_v39  ;;  %v1539_v45 = vadd.f32 %v2284_v40, %v1498_v28 }
 0x1da   :  { %v1590_v46 = vadd.f32 %v2103_v42, %v1577_v44  ;;  %v1580_v47 = vadd.f32 %v2306_v43, %v1539_v45 }
 0x1dc   :  { %v1591_v48 = vadd.f32 %v2103_v42, %v1580_v47  ;;  %v1592_v49 = vmax.f32 %v1590_v46, 0.0 }
 0x1de   :  { %v1593_v50 = vmax.f32 %v1591_v48, 0.0 }
 0x1e0   :  { %v1594_v51 = vpack.c.bf16 %v1593_v50, %v1592_v49 }
 0x1e2   :  { %2351 = vmatmul.mubr.bf16.vlgmr.msra.gmra.mrb[16].mxu0 %v1594_v51 }
 0x1e3   :  { %2390 = vmatprep.mubr.msk.bf16.mxu0 %vm2760_vm0, %v2759_v33  ;;  %2375 = vmatpush3.bf16.msra.mxu0 %v2554_v54 }
 0x1e4   :  { %2376 = vmatprep.subr.bf16.mxu0 %v2759_v33 }
 0x1e7   :  { %2377 = vmatpush3.bf16.msra.mxu0 %v2555_v55 }
 0x1e8   :  { %2378 = vmatprep.subr.bf16.mxu0 %v2759_v33 }
 0x1eb   :  { %2379 = vmatpush3.bf16.msra.mxu0 %v2556_v56 }
 0x1ec   :  { %2380 = vmatprep.subr.bf16.mxu0 %v2759_v33 }
 0x1ef   :  { %2381 = vmatpush3.bf16.msra.mxu0 %v2557_v57 }
 0x1f0   :  { %2382 = vmatprep.subr.bf16.mxu0 %v2759_v33 }
 0x1f3   :  { %2383 = vmatpush3.bf16.msra.mxu0 %v2558_v58 }
 0x1f4   :  { %2384 = vmatprep.subr.bf16.mxu0 %v2759_v33 }
 0x1f7   :  { %2385 = vmatpush3.bf16.msra.mxu0 %v2559_v59 }
 0x1f8   :  { %2386 = vmatprep.subr.bf16.mxu0 %v2759_v33 }
 0x1fb   :  { %2387 = vmatpush3.bf16.msra.mxu0 %v2560_v6 }
 0x1fc   :  { %2388 = vmatprep.subr.bf16.mxu0 %v2759_v33  ;;  %v2122_v33 = vld [vmem:[%s2993_s10] ss:$0 sm:$0xff] }
 0x1ff   :  { %2389 = vmatpush3.bf16.msra.mxu0 %v2561_v7 }
 0x2b5   :  { %v1700_v61 = vpop.f32.mrb[16].mxu0 }
 0x2b6   :  { %v1701_v62 = vadd.f32 %v2104_v60, %v1700_v61  ;;  %v2352_v63 = vpop.f32.mrb[17].mxu0 }
 0x2b7   :  { %v1703_v0 = vpop.f32.mrb[18].mxu0 }
 0x2b8   :  { %v1704_v1 = vadd.f32 %v2104_v60, %v1703_v0  ;;  %v2353_v2 = vpop.f32.mrb[19].mxu0  ;;  %v1707_v3 = vmax.f32 %v1701_v62, 0.0 }
 0x2ba   :  { %v1708_v4 = vmax.f32 %v1704_v1, 0.0 }
 0x2bc   :  { %v1709_v5 = vpack.c.bf16 %v1708_v4, %v1707_v3 }
 0x2be   :  { %2371 = vmatmul.mubr.bf16.vlgmr.msra.gmra.mrb[16].mxu1 %v1709_v5 }
 0x391   :  { %v1815_v9 = vpop.f32.mrb[16].mxu1 }
 0x392   :  { %v1816_v10 = vadd.f32 %v2113_v8, %v1815_v9  ;;  %v2372_v11 = vpop.f32.mrb[17].mxu1 }
 0x393   :  { %v1818_v12 = vpop.f32.mrb[18].mxu1 }
 0x394   :  { %v1819_v13 = vadd.f32 %v2113_v8, %v1818_v12  ;;  %v2373_v14 = vpop.f32.mrb[19].mxu1  ;;  %v1822_v15 = vmax.f32 %v1816_v10, 0.0 }
 0x396   :  { %v1823_v16 = vmax.f32 %v1819_v13, 0.0 }
 0x398   :  { %v1824_v17 = vpack.c.bf16 %v1823_v16, %v1822_v15 }
 0x39a   :  { %2391 = vmatmul.mubr.bf16.vlgmr.msra.gmra.mrb[20].mxu0 %v1824_v17 }
 0x46d   :  { %v1930_v18 = vpop.f32.mrb[20].mxu0 }
 0x46e   :  { %v1931_v19 = vadd.f32 %v2122_v33, %v1930_v18  ;;  %v2392_v20 = vpop.f32.mrb[21].mxu0 }
 0x46f   :  { %v1933_v21 = vpop.f32.mrb[22].mxu0 }
 0x470   :  { %1937 = vst [vmem:[#allocation14] sm:$0xff] %v1931_v19  ;;  %v1934_v22 = vadd.f32 %v2122_v33, %v1933_v21  ;;  %v2393_v23 = vpop.f32.mrb[23].mxu0 }
 0x472   :  { %1938 = vst [vmem:[#allocation14 + $0x8] sm:$0xff] %v1934_v22 }
 0x473   :  { %2727 = shalt.err (!%p2724_p4)
}
 0x474   :  { %s2728_s7 = scalar_lea.hbm %s2994_s11, 256 }
 0x475   :  { %p2729_p5 = scmp.ne.s32.totalorder %s2994_s11, %s2728_s7  ;;  %p2732_p6 = scmp.lt.u32.totalorder %s2728_s7, %s2994_s11 }
 0x477   :  { %p2734_p7 = pnand %p2732_p6, %p2729_p5 }
 0x479   :  { %2737 = shalt.err (!%p2734_p7)
}
 0x47a   :  { %s2762_s1 = smov 128   ;;  %s2763_s20 = smov 8  }
 0x47b   :  { %1950 = dma.vmem_to_hbm [thread:$0]  %s1945_s14, 256, %s2994_s11, [#allocation4], %s2762_s1, %s2762_s1, %s2763_s20  }
 0x47c   :  { %2746 = dma.done.wait [#allocation4], 256  }
 0x47d   :  { %2747 = vsyncadd [#allocation4], 4294967040 }
 0x47e   :  { %1954 = vsyncpa [#allocation3], 1 }
 0x47f   :  { %1955 = vsyncpa [#allocation6], 1 }
 0x480   :  { %1956 = vsyncpa [#allocation9], 1 }
 0x481   :  { %1957 = vsyncpa [#allocation12], 1 }
 0x482   :  { %1958 = vsyncpa [#allocation4], 1 }

</bundles_post_ra>
